<compile_context>
chip_gen: v6e
topology: v6e:2x2x1
jax: 0.10.0
libtpu: 0.0.40
codegen_flags: <defaults>
</compile_context>

<pallas_src>
import functools

import jax
import jax.numpy as jnp
from jax.experimental import pallas as pl
from jax.experimental.pallas import tpu as pltpu


def _mlp_kernel(x_ref, w1_ref, b1_ref, w2_ref, b2_ref, o_ref):
    # Hidden layer: (TB, I) @ (I, H) + (1, H) -> sigmoid   (MXU + VPU + EUP)
    h = jnp.dot(x_ref[...], w1_ref[...], preferred_element_type=jnp.float32)
    h = jax.nn.sigmoid(h + b1_ref[...])
    # Output layer: (TB, H) @ (H, O) + (1, O) -> sigmoid
    y = jnp.dot(h, w2_ref[...], preferred_element_type=jnp.float32)
    o_ref[...] = jax.nn.sigmoid(y + b2_ref[...]).astype(o_ref.dtype)


def _round_up(v, m):
    return ((v + m - 1) // m) * m


@functools.partial(jax.jit, static_argnames=("block_batch",))
def rede_neural_forward(x, w1, b1, w2, b2, *, block_batch=1024):
    """Runs the 2-layer sigmoid MLP as a batch-tiled Pallas kernel.

    Args:
      x:  (B, input_size)          float32
      w1: (input_size, hidden)     float32   (== PyTorch camada_oculta.weight.T)
      b1: (hidden,)                float32
      w2: (hidden, output_size)    float32   (== PyTorch camada_saida.weight.T)
      b2: (output_size,)           float32
      block_batch: max rows per grid step (rounded down to a multiple of 8).
    Returns:
      (B, output_size) float32
    """
    B, I = x.shape
    H = w1.shape[1]
    O = w2.shape[1]

    b1_2d = b1.reshape(1, H)
    b2_2d = b2.reshape(1, O)

    # Batch tile: multiple of 8 (sublane), capped by block_batch, and no bigger
    # than the (sublane-padded) batch itself.
    tb = min(max(8, (block_batch // 8) * 8), _round_up(B, 8))
    # Pad batch so it divides evenly into tiles; padded rows are sliced off.
    Bp = _round_up(B, tb)
    if Bp != B:
        x = jnp.pad(x, ((0, Bp - B), (0, 0)))
    grid = (Bp // tb,)

    # Advisory cost for XLA's scheduler (matmul flops + sigmoid exps + bytes).
    cost = pl.CostEstimate(
        flops=2 * Bp * (I * H + H * O),
        transcendentals=Bp * (H + O),
        bytes_accessed=4 * (Bp * I + I * H + H + H * O + O + Bp * O),
    )

    out = pl.pallas_call(
        _mlp_kernel,
        out_shape=jax.ShapeDtypeStruct((Bp, O), jnp.float32),
        grid_spec=pltpu.PrefetchScalarGridSpec(
            num_scalar_prefetch=0,
            grid=grid,
            in_specs=[
                # Batch-tiled activation: new tile each grid step (pipelined).
                pl.BlockSpec((tb, I), lambda i: (i, 0)),
                # Weights / biases: same block every step -> resident in VMEM.
                pl.BlockSpec((I, H), lambda i: (0, 0)),
                pl.BlockSpec((1, H), lambda i: (0, 0)),
                pl.BlockSpec((H, O), lambda i: (0, 0)),
                pl.BlockSpec((1, O), lambda i: (0, 0)),
            ],
            out_specs=pl.BlockSpec((tb, O), lambda i: (i, 0)),
        ),
        compiler_params=pltpu.CompilerParams(
            # Batch tiles are independent -> shard across both TCs on v7x.
            dimension_semantics=("parallel",),
            # Headroom beyond v5e's 16 MiB default scoped limit; safe on v7x.
            vmem_limit_bytes=32 * 1024 * 1024,
        ),
        cost_estimate=cost,
    )(x, w1, b1_2d, w2, b2_2d)

    return out[:B] if Bp != B else out
    # TODO(synk): output last dim (output_size) < 128 lanes -> masked stores;
    # packing multiple logical outputs into one 128-wide lane-dense slab would
    # require changing the call-site layout, so it is left as-is.


def _reference_forward(x, w1, b1, w2, b2):
    h = jax.nn.sigmoid(x @ w1 + b1)
    return jax.nn.sigmoid(h @ w2 + b2)


if __name__ == "__main__":
    # Small shapes consistent with the module: batch=8, input=16, hidden=32, output=8
    batch, input_size, hidden_size, output_size = 8, 16, 32, 8

    key = jax.random.PRNGKey(0)
    kx, kw1, kb1, kw2, kb2 = jax.random.split(key, 5)

    x = jax.random.normal(kx, (batch, input_size), dtype=jnp.float32)
    # Deterministic parameter init (Linear-style scaling).
    w1 = jax.random.normal(kw1, (input_size, hidden_size), dtype=jnp.float32) * 0.1
    b1 = jax.random.normal(kb1, (hidden_size,), dtype=jnp.float32) * 0.1
    w2 = jax.random.normal(kw2, (hidden_size, output_size), dtype=jnp.float32) * 0.1
    b2 = jax.random.normal(kb2, (output_size,), dtype=jnp.float32) * 0.1

    out = rede_neural_forward(x, w1, b1, w2, b2)
    out = jax.block_until_ready(out)
    ref = _reference_forward(x, w1, b1, w2, b2)
    assert out.shape == (batch, output_size)
    assert jnp.allclose(out, ref, atol=1e-5, rtol=1e-5)

    # Exercise the multi-tile pipelined grid (incl. a non-divisible batch) to
    # make sure the batch tiling + padding path stays correct.
    big_batch = 2048 + 13
    xb = jax.random.normal(kx, (big_batch, input_size), dtype=jnp.float32)
    out_b = jax.block_until_ready(
        rede_neural_forward(xb, w1, b1, w2, b2, block_batch=512)
    )
    ref_b = _reference_forward(xb, w1, b1, w2, b2)
    assert out_b.shape == (big_batch, output_size)
    assert jnp.allclose(out_b, ref_b, atol=1e-5, rtol=1e-5)

    print("KERNEL_OK")
</pallas_src>

<mosaic_0001>
module attributes {stable_mosaic.version = 11 : i64} {
  func.func @_mlp_kernel(%arg0: i32, %arg1: memref<8x16xf32, #tpu.memory_space<vmem>>, %arg2: memref<16x32xf32, #tpu.memory_space<vmem>>, %arg3: memref<1x32xf32, #tpu.memory_space<vmem>>, %arg4: memref<32x8xf32, #tpu.memory_space<vmem>>, %arg5: memref<1x8xf32, #tpu.memory_space<vmem>>, %arg6: memref<8x8xf32, #tpu.memory_space<vmem>>) attributes {dimension_semantics = [#tpu.dimension_semantics<parallel>], iteration_bounds = array<i64: 1>, scalar_prefetch = 0 : i64, scratch_operands = 0 : i64, tpu.core_type = #tpu.core_type<tc>, window_params = [{transform_indices = @transform_0, window_bounds = array<i64: 8, 16>}, {pipeline_mode = #tpu.pipeline_mode<synchronous>, transform_indices = @transform_1, window_bounds = array<i64: 16, 32>}, {pipeline_mode = #tpu.pipeline_mode<synchronous>, transform_indices = @transform_2, window_bounds = array<i64: 1, 32>}, {pipeline_mode = #tpu.pipeline_mode<synchronous>, transform_indices = @transform_3, window_bounds = array<i64: 32, 8>}, {pipeline_mode = #tpu.pipeline_mode<synchronous>, transform_indices = @transform_4, window_bounds = array<i64: 1, 8>}, {transform_indices = @transform_5, window_bounds = array<i64: 8, 8>}]} {
    %c0 = arith.constant 0 : index
    %c0_0 = arith.constant 0 : index
    %0 = vector.load %arg1[%c0, %c0_0] : memref<8x16xf32, #tpu.memory_space<vmem>>, vector<8x16xf32>
    %c0_1 = arith.constant 0 : index
    %c0_2 = arith.constant 0 : index
    %1 = vector.load %arg2[%c0_1, %c0_2] : memref<16x32xf32, #tpu.memory_space<vmem>>, vector<16x32xf32>
    %cst = arith.constant dense<0.000000e+00> : vector<8x32xf32>
    %2 = tpu.matmul %0, %1, %cst {dimension_numbers = #tpu.dot_dimension_numbers<[1], [0], [0], [1], [0, 0, 1, 1], [], []>} : vector<8x16xf32>, vector<16x32xf32>, vector<8x32xf32> -> vector<8x32xf32>
    %c0_3 = arith.constant 0 : index
    %c0_4 = arith.constant 0 : index
    %3 = vector.load %arg3[%c0_3, %c0_4] : memref<1x32xf32, #tpu.memory_space<vmem>>, vector<1x32xf32>
    %4 = vector.broadcast %3 : vector<1x32xf32> to vector<8x32xf32>
    %5 = arith.addf %2, %4 : vector<8x32xf32>
    %6 = arith.negf %5 : vector<8x32xf32>
    %7 = math.exp %6 : vector<8x32xf32>
    %cst_5 = arith.constant 1.000000e+00 : f32
    %8 = vector.broadcast %cst_5 : f32 to vector<8x32xf32>
    %9 = arith.addf %8, %7 : vector<8x32xf32>
    %10 = arith.divf %8, %9 : vector<8x32xf32>
    %c0_6 = arith.constant 0 : index
    %c0_7 = arith.constant 0 : index
    %11 = vector.load %arg4[%c0_6, %c0_7] : memref<32x8xf32, #tpu.memory_space<vmem>>, vector<32x8xf32>
    %cst_8 = arith.constant dense<0.000000e+00> : vector<8x8xf32>
    %12 = tpu.matmul %10, %11, %cst_8 {dimension_numbers = #tpu.dot_dimension_numbers<[1], [0], [0], [1], [0, 0, 1, 1], [], []>} : vector<8x32xf32>, vector<32x8xf32>, vector<8x8xf32> -> vector<8x8xf32>
    %c0_9 = arith.constant 0 : index
    %c0_10 = arith.constant 0 : index
    %13 = vector.load %arg5[%c0_9, %c0_10] : memref<1x8xf32, #tpu.memory_space<vmem>>, vector<1x8xf32>
    %14 = vector.broadcast %13 : vector<1x8xf32> to vector<8x8xf32>
    %15 = arith.addf %12, %14 : vector<8x8xf32>
    %16 = arith.negf %15 : vector<8x8xf32>
    %17 = math.exp %16 : vector<8x8xf32>
    %cst_11 = arith.constant 1.000000e+00 : f32
    %18 = vector.broadcast %cst_11 : f32 to vector<8x8xf32>
    %19 = arith.addf %18, %17 : vector<8x8xf32>
    %20 = arith.divf %18, %19 : vector<8x8xf32>
    %c0_12 = arith.constant 0 : index
    %c0_13 = arith.constant 0 : index
    %21 = vector.load %arg6[%c0_12, %c0_13] : memref<8x8xf32, #tpu.memory_space<vmem>>, vector<8x8xf32>
    tpu.vector_store %arg6[%c0_12, %c0_13], %20 {strides = array<i32>} : memref<8x8xf32, #tpu.memory_space<vmem>>, vector<8x8xf32>,
    return
  }
  func.func @transform_0(%arg0: i32) -> (i32, i32) {
    %c0_i32 = arith.constant 0 : i32
    %c0_i32_0 = arith.constant 0 : i32
    return %arg0, %c0_i32 : i32, i32
  }
  func.func @transform_1(%arg0: i32) -> (i32, i32) {
    %c0_i32 = arith.constant 0 : i32
    %c0_i32_0 = arith.constant 0 : i32
    %c0_i32_1 = arith.constant 0 : i32
    return %c0_i32, %c0_i32_0 : i32, i32
  }
  func.func @transform_2(%arg0: i32) -> (i32, i32) {
    %c0_i32 = arith.constant 0 : i32
    %c0_i32_0 = arith.constant 0 : i32
    %c0_i32_1 = arith.constant 0 : i32
    return %c0_i32, %c0_i32_0 : i32, i32
  }
  func.func @transform_3(%arg0: i32) -> (i32, i32) {
    %c0_i32 = arith.constant 0 : i32
    %c0_i32_0 = arith.constant 0 : i32
    %c0_i32_1 = arith.constant 0 : i32
    return %c0_i32, %c0_i32_0 : i32, i32
  }
  func.func @transform_4(%arg0: i32) -> (i32, i32) {
    %c0_i32 = arith.constant 0 : i32
    %c0_i32_0 = arith.constant 0 : i32
    %c0_i32_1 = arith.constant 0 : i32
    return %c0_i32, %c0_i32_0 : i32, i32
  }
  func.func @transform_5(%arg0: i32) -> (i32, i32) {
    %c0_i32 = arith.constant 0 : i32
    %c0_i32_0 = arith.constant 0 : i32
    return %arg0, %c0_i32 : i32, i32
  }
}

</mosaic_0001>

<bundles_post_ra>
// kernel: rede_neural_forward.1
= control target key start
LH: loop header
LB: loop body
LE: loop exit
PB: predicated region body
PF: predicated region fallthrough
CT: control target
= control target key end

     0   :  { %v283_v1 = vmov 0.0   ;;  %vm284_vm0 = vmmov 0   ;;  %s346_s0 = inlined_call_operand.vmem [shape: f32[8,16], index: 0, kind: input, shape index: {}]   ;;  %s347_s1 = inlined_call_operand.vmem [shape: f32[16,32], index: 1, kind: input, shape index: {}]   ;;  %s348_s2 = inlined_call_operand.vmem [shape: f32[1,32], index: 2, kind: input, shape index: {}]   ;;  %s349_s3 = inlined_call_operand.vmem [shape: f32[32,8], index: 3, kind: input, shape index: {}]   ;;  %s350_s4 = inlined_call_operand.vmem [shape: f32[1,8], index: 4, kind: input, shape index: {}]   ;;  %s351_s5 = inlined_call_operand.hbm [shape: f32[8,8], index: 5, kind: output, shape index: {}]  }
   0x1   :  { %v23_v0 = vld [vmem:[%s347_s1 + $0x8] sm:$0xff]  ;;  %232 = vmatprep.subr.mxu0 %v283_v1  ;;  %v22_v2 = vld [vmem:[%s347_s1] sm:$0xff]  ;;  %236 = vmatprep.mubr.msk.f32.mxu0 %vm284_vm0, %v283_v1 }
   0x2   :  { %10 = vsyncpa [#allocation3], 0  ;;  %233 = vmatpush3.msra.mxu0 %v23_v0  ;;  %v21_v3 = vld [vmem:[%s346_s0] sm:$0xff]  ;;  %vm31_vm1 = vcmask 130048   ;;  %239 = vmatprep.subr.mxu1 %v283_v1  ;;  %v114_v4 = vld [vmem:[%s349_s3 + $0x18] sm:$0xff]  ;;  %vm122_vm2 = vcmask 261120  }
   0x3   :  { %234 = vmatprep.subr.mxu0 %v283_v1  ;;  %247 = vmatprep.mubr.msk.f32.mxu1 %vm284_vm0, %v283_v1  ;;  %v113_v5 = vld [vmem:[%s349_s3 + $0x10] sm:$0xff]  ;;  %v112_v6 = vld [vmem:[%s349_s3 + $0x8] sm:$0xff]  ;;  %v111_v7 = vld [vmem:[%s349_s3] sm:$0xff]  ;;  %vm202_vm3 = vcmask 64512  }
   0x4   :  { %235 = vmatpush3.msra.mxu0 %v22_v2  ;;  %240 = vmatpush3.msra.mxu1 %v114_v4  ;;  %v218_v8 = vld [vmem:[%s348_s2] ss:$0 sm:$0xff]  ;;  %s285_s2 = smov [#allocation2]  }
   0x5   :  { %237 = vmatmul.mubr.msk.f32.vlgmr.msra.gmra.mxu0 %vm31_vm1, %v21_v3  ;;  %241 = vmatprep.subr.mxu1 %v283_v1  ;;  %v221_v16 = vld [vmem:[%s350_s4] ss:$0 sm:$0xff]  ;;  %s210_s8 = sshll.u32 %s285_s2, 4  ;;  %s211_s8 = int_to_ptr.vmem [resolvable:$true] %s210_s8 }
   0x6   :  { %242 = vmatpush3.msra.mxu1 %v113_v5  ;;  %s261_s9 = scalar_lea.vmem %s211_s8, 128  ;;  %p266_p1 = scmp.lt.s32.totalorder %s211_s8, %s211_s8 }
   0x7   :  { %243 = vmatprep.subr.mxu1 %v283_v1  ;;  %p262_p0 = scmp.ne.s32.totalorder %s211_s8, %s261_s9  ;;  %p267_p2 = scmp.lt.s32.totalorder %s261_s9, %s261_s9 }
   0x8   :  { %244 = vmatpush3.msra.mxu1 %v112_v6 }
   0x9   :  { %245 = vmatprep.subr.mxu1 %v283_v1  ;;  %p268_p3 = por %p267_p2, %p266_p1 }
   0xa   :  { %246 = vmatpush3.msra.mxu1 %v111_v7 }
   0xb   :  { %p269_p4 = pnand %p268_p3, %p262_p0 }
  0xc5   :  { %v101_v9 = vpop.f32.mrf.mxu0 }
  0xc6   :  { %v102_v10 = vadd.f32 %v218_v8, %v101_v9 }
  0xc7   :  { %v238_v11 = vpop.f32.mrf.mxu0 }
  0xc8   :  { %v220_v12 = vmul.f32 -1.442695, %v102_v10 }
  0xca   :  { %253 = vpow2.f32 %v220_v12 }
  0xd7   :  { %v254_v13 = vpop.eup %253 }
  0xd8   :  { %v108_v14 = vadd.f32 1.0, %v254_v13 }
  0xda   :  { %255 = vrcp.f32 %v108_v14 }
  0xe7   :  { %v256_v15 = vpop.eup %255 }
  0xe8   :  { %248 = vmatmul.mubr.msk.f32.vlgmr.msra.gmra.mxu1 %vm122_vm2, %v256_v15 }
 0x1a8   :  { %v192_v17 = vpop.f32.mrf.mxu1 }
 0x1a9   :  { %v193_v18 = vadd.f32 %v221_v16, %v192_v17 }
 0x1aa   :  { %v249_v19 = vpop.f32.mrf.mxu1 }
 0x1ab   :  { %v223_v20 = vmul.f32 -1.442695, %v193_v18 }
 0x1ad   :  { %257 = vpow2.f32 %v223_v20 }
 0x1ba   :  { %v258_v21 = vpop.eup %257 }
 0x1bb   :  { %v199_v22 = vadd.f32 1.0, %v258_v21 }
 0x1bd   :  { %259 = vrcp.f32 %v199_v22 }
 0x1ca   :  { %v260_v23 = vpop.eup %259 }
 0x1cb   :  { %203 = vst.msk [vmem:[#allocation2] sm:$0xff] %vm202_vm3, %v260_v23 }
 0x1cc   :  { %272 = shalt.err (!%p269_p4)
}
 0x1cd   :  { %213 = dma.vmem_to_hbm [thread:$0]  %s211_s8, 128, %s351_s5, [#allocation3]  }
 0x1ce   :  { %281 = dma.done.wait [#allocation3], 128  }
 0x1cf   :  { %282 = vsyncadd [#allocation3], 4294967168 }
 0x1d0   :  { %217 = vsyncpa [#allocation3], 1 }

</bundles_post_ra>
